<compile_context>
chip_gen: v6e
topology: v6e:2x2x1
jax: 0.10.0
libtpu: 0.0.40
codegen_flags: <defaults>
</compile_context>

<pallas_src>
import functools

import jax
import jax.numpy as jnp
import numpy as np
from jax.experimental import pallas as pl
from jax.experimental.pallas import tpu as pltpu


# --------------------------------------------------------------------------
# Parameter setup (mirrors EmbedderWindowed.__init__ / update_activate_freq)
# --------------------------------------------------------------------------
def make_embedder_params(input_dims, max_freq_log2, num_freqs,
                         log_sampling=True, include_input=True,
                         window_start=0.0, window_end=1000.0,
                         step=1e15):
    if log_sampling:
        freq_bands = 2.0 ** np.linspace(0.0, max_freq_log2, num_freqs)
    else:
        freq_bands = np.linspace(2.0 ** 0.0, 2.0 ** max_freq_log2, num_freqs)

    # update_activate_freq(step)  (host-side numpy, exactly as in the module)
    window_size = window_end - window_start
    alpha = (step - window_start) / window_size
    alpha = max(min(alpha, 1.0), 0.0)
    alpha = alpha * num_freqs
    idx = np.arange(num_freqs)
    freq_weight = (1.0 - np.cos(np.pi * np.clip(alpha - idx, 0.0, 1.0))) / 2.0

    out_dim = (input_dims if include_input else 0) + 2 * num_freqs * input_dims
    return (freq_bands.astype(np.float32),
            freq_weight.astype(np.float32),
            out_dim)


# --------------------------------------------------------------------------
# Pallas kernels
# --------------------------------------------------------------------------
def _embed_kernel_doubling(nact_ref, w_ref, x_ref, o_ref, *, freq_bands,
                           include_input, restart):
    """Power-of-two bands: angle-doubling recurrence, branch-free.

    x_ref: (TR, C) lane-dense flat input tile.
    o_ref: (P, TR, C) output slab; plane 0 = x (if include_input),
           plane base+2i = sin(f_i x)*w_i, plane base+2i+1 = cos(f_i x)*w_i.
    Inactive frequencies have w_i == 0 (from SMEM) so their planes come out
    exactly zero without branching.
    """
    del nact_ref  # not needed: recurrence makes per-freq trig nearly free
    x = x_ref[...].astype(jnp.float32)

    base = 0
    if include_input:
        o_ref[0, :, :] = x.astype(o_ref.dtype)
        base = 1

    s = None
    c = None
    for i, f in enumerate(freq_bands):            # static unroll, static freqs
        if i % restart == 0:
            # Direct evaluation every `restart` octaves bounds recurrence
            # error to <= restart-1 doublings (~1e-6 abs for restart=4).
            xf = x * f
            s = jnp.sin(xf)
            c = jnp.cos(xf)
        else:
            # Exact doubling: f_i = 2 * f_{i-1}.
            s, c = 2.0 * s * c, 1.0 - 2.0 * s * s
        w = w_ref[i]                              # SMEM scalar (runtime window)
        o_ref[base + 2 * i, :, :] = (s * w).astype(o_ref.dtype)
        o_ref[base + 2 * i + 1, :, :] = (c * w).astype(o_ref.dtype)


def _embed_kernel_general(nact_ref, w_ref, x_ref, o_ref, *, freq_bands,
                          include_input):
    """Fallback for non power-of-two bands: direct sin/cos, gated on n_act so
    fully-inactive frequencies skip the expensive transcendental path."""
    x = x_ref[...].astype(jnp.float32)

    base = 0
    if include_input:
        o_ref[0, :, :] = x.astype(o_ref.dtype)
        base = 1

    n_act = nact_ref[0]
    zeros = jnp.zeros(x.shape, o_ref.dtype)       # hoisted, reused

    for i, f in enumerate(freq_bands):
        sp = base + 2 * i
        cp = sp + 1

        @pl.when(i < n_act)
        def _active(sp=sp, cp=cp, f=f, i=i):
            w = w_ref[i]
            xf = x * f
            o_ref[sp, :, :] = (jnp.sin(xf) * w).astype(o_ref.dtype)
            o_ref[cp, :, :] = (jnp.cos(xf) * w).astype(o_ref.dtype)

        @pl.when(i >= n_act)
        def _inactive(sp=sp, cp=cp):
            o_ref[sp, :, :] = zeros
            o_ref[cp, :, :] = zeros


# --------------------------------------------------------------------------
# Tiling helpers
# --------------------------------------------------------------------------
def _pick_lane_width(e, max_c):
    """Pick a lane width (multiple of 128) that divides e when possible so the
    wrapper needs no jnp.pad copy and no post-kernel trim."""
    max_c = max(128, (max_c // 128) * 128)
    for cc in sorted({max_c, 1024, 512, 256, 128}, reverse=True):
        if cc <= max_c and e >= cc and e % cc == 0:
            return cc
    if e < max_c:
        return 128 * pl.cdiv(e, 128)      # single (padded) row, minimal pad
    return max_c


def _pick_row_tile(r, tile_rows):
    """Rows per grid step.  Ensure >= 2 grid steps when possible so the
    ('parallel',) axis actually splits across v7x's two TensorCores."""
    tr = min(int(tile_rows), r)
    if r > 8 and pl.cdiv(r, tr) < 2:
        tr = 8 * pl.cdiv(pl.cdiv(r, 2), 8)
    return tr


# --------------------------------------------------------------------------
# Wrapper
# --------------------------------------------------------------------------
def embedder_windowed(x, freq_bands, freq_weight, *, include_input=True,
                      lane_width=1024, tile_rows=128, out_dtype=None,
                      interleave=True):
    """Windowed NeRF positional encoding.

    interleave=True  -> [..., out_dim] in PyTorch concat order (exact module
                        semantics; one fused XLA copy rearranges the slab).
    interleave=False -> piece-major slab of shape (P, ..., d) straight from
                        the kernel (no extra HBM round trip).  Contract it
                        with a downstream weight via `piece_major_weight`.
    out_dtype        -> e.g. jnp.bfloat16 to halve writeback bytes when the
                        consumer tolerates it (default: x.dtype, exact).
    tile_rows/lane_width: per-generation tuning knobs (v6e can afford
                        tile_rows=256; keep the default on v5e/v7x).
    """
    orig_shape = x.shape
    d = int(orig_shape[-1])
    lead = orig_shape[:-1]
    n = int(np.prod(lead)) if lead else 1

    fb_np = np.asarray(freq_bands, np.float64).reshape(-1)
    num_freqs = int(fb_np.shape[0])
    n_pieces = (1 if include_input else 0) + 2 * num_freqs
    out_dim = n_pieces * d
    out_dtype = x.dtype if out_dtype is None else jnp.dtype(out_dtype)

    # --- lane-dense flat 2-D view of the input -----------------------------
    e = n * d
    c = _pick_lane_width(e, int(lane_width))
    r = pl.cdiv(e, c)
    tr = _pick_row_tile(r, tile_rows)
    r_pad = pl.cdiv(r, tr) * tr
    e_pad = r_pad * c

    x_flat = x.reshape(-1)
    if e_pad != e:
        # Only the ragged tail is padded; common batch shapes need no pad.
        x_flat = jnp.pad(x_flat, (0, e_pad - e))
    x2 = x_flat.reshape(r_pad, c)

    # --- runtime window weights + host-computed active-frequency count -----
    fw_np = np.asarray(freq_weight, np.float32).reshape(-1)
    fw = jnp.asarray(fw_np)
    nz = np.nonzero(fw_np)[0]
    n_act_host = int(nz[-1] + 1) if nz.size else 0
    n_act = jnp.full((1,), n_act_host, jnp.int32)     # runtime scalar prefetch

    # --- choose kernel: doubling recurrence when bands are exact x2 --------
    is_doubling = (num_freqs <= 1) or bool(
        np.all(np.abs(fb_np[1:] / fb_np[:-1] - 2.0) < 1e-6))
    bands_static = tuple(float(f) for f in fb_np)
    restart = 4
    if is_doubling:
        kernel = functools.partial(_embed_kernel_doubling,
                                   freq_bands=bands_static,
                                   include_input=include_input,
                                   restart=restart)
        n_direct_trig = pl.cdiv(max(num_freqs, 1), restart)
    else:
        kernel = functools.partial(_embed_kernel_general,
                                   freq_bands=bands_static,
                                   include_input=include_input)
        n_direct_trig = num_freqs

    # --- VMEM budget & cost hint -------------------------------------------
    in_bytes_tile = tr * c * jnp.dtype(x.dtype).itemsize
    out_bytes_tile = n_pieces * tr * c * out_dtype.itemsize
    footprint = 2 * (in_bytes_tile + out_bytes_tile)      # double-buffered
    vmem_limit = int(min(max(32 << 20, footprint + (8 << 20)), 48 << 20))

    cost = pl.CostEstimate(
        flops=int(e) * (6 * num_freqs + 1),
        transcendentals=int(e) * 2 * int(n_direct_trig),
        bytes_accessed=int(e) * jnp.dtype(x.dtype).itemsize
        + int(e) * n_pieces * out_dtype.itemsize,
    )

    out = pl.pallas_call(
        kernel,
        out_shape=jax.ShapeDtypeStruct((n_pieces, r_pad, c), out_dtype),
        grid_spec=pltpu.PrefetchScalarGridSpec(
            num_scalar_prefetch=1,                                # n_act
            grid=(r_pad // tr,),
            in_specs=[
                pl.BlockSpec(memory_space=pltpu.SMEM),            # freq_weight
                pl.BlockSpec((tr, c), lambda i, nact: (i, 0)),    # x tile
            ],
            out_specs=pl.BlockSpec((n_pieces, tr, c),
                                   lambda i, nact: (0, i, 0)),
        ),
        compiler_params=pltpu.CompilerParams(
            dimension_semantics=("parallel",),
            vmem_limit_bytes=vmem_limit),
        cost_estimate=cost,
    )(n_act, fw, x2)

    # --- post-kernel layout plumbing ----------------------------------------
    # Kept as one contiguous slice/reshape/transpose chain so XLA emits a
    # single fused copy (and nothing at all for the piece-major path when the
    # input needed no padding).
    out = out.reshape(n_pieces, e_pad)
    if e_pad != e:
        out = out[:, :e]
    out = out.reshape((n_pieces,) + lead + (d,))
    if not interleave:
        return out                                  # piece-major (P, ..., d)
    out = jnp.moveaxis(out, 0, -2)                  # -> (..., P, d)
    return out.reshape(lead + (out_dim,))           # PyTorch concat order


def piece_major_weight(w, num_freqs, input_dims, include_input=True):
    """Reshape a concat-order weight (out_dim, H) to (P, d, H) so a consumer
    can contract the piece-major kernel output directly:
        jnp.einsum('p...d,pdh->...h', embedder_windowed(..., interleave=False), w_pm)
    equals `embedder_windowed(...) @ w` without the (P,N,d)->(N,P,d) HBM copy."""
    n_pieces = (1 if include_input else 0) + 2 * num_freqs
    return jnp.asarray(w).reshape(n_pieces, input_dims, -1)


# --------------------------------------------------------------------------
# Pure-JAX reference (direct transcription of the PyTorch forward)
# --------------------------------------------------------------------------
def embedder_ref(x, freq_bands, freq_weight, include_input=True):
    outs = []
    if include_input:
        outs.append(x)
    for f, w in zip(np.asarray(freq_bands), np.asarray(freq_weight)):
        outs.append(jnp.sin(x * float(f)) * float(w))
        outs.append(jnp.cos(x * float(f)) * float(w))
    return jnp.concatenate(outs, axis=-1)


if __name__ == "__main__":
    # Module config (deterministic, built in-script)
    input_dims = 4
    num_freqs = 6
    max_freq_log2 = num_freqs - 1
    include_input = True

    freq_bands, freq_weight, out_dim = make_embedder_params(
        input_dims=input_dims, max_freq_log2=max_freq_log2,
        num_freqs=num_freqs, log_sampling=True, include_input=include_input,
        window_start=0.0, window_end=1000.0,
        step=500.0,  # nontrivial coarse-to-fine window: weights [1,1,1,0,0,0]
    )

    key = jax.random.PRNGKey(0)
    # Ragged row count so the wrapper's pad/trim path is exercised too.
    x = jax.random.normal(key, (2, 177, input_dims), dtype=jnp.float32)

    # 1) Default path: exact PyTorch concat-order output.
    y = embedder_windowed(x, freq_bands, freq_weight,
                          include_input=include_input)
    y = jax.block_until_ready(y)
    y_ref = embedder_ref(x, freq_bands, freq_weight,
                         include_input=include_input)
    assert y.shape == (2, 177, out_dim), y.shape
    np.testing.assert_allclose(np.asarray(y), np.asarray(y_ref),
                               rtol=1e-5, atol=1e-5)

    # 2) Piece-major fast path (review item #1): no output transpose; the
    #    downstream weight is reshaped once instead.
    y_pm = embedder_windowed(x, freq_bands, freq_weight,
                             include_input=include_input, interleave=False)
    y_pm = jax.block_until_ready(y_pm)
    w = jax.random.normal(jax.random.PRNGKey(1), (out_dim, 8),
                          dtype=jnp.float32)
    w_pm = piece_major_weight(w, num_freqs, input_dims, include_input)
    proj_pm = jnp.einsum('p...d,pdh->...h', y_pm, w_pm)
    proj_ref = y_ref @ w
    np.testing.assert_allclose(np.asarray(proj_pm), np.asarray(proj_ref),
                               rtol=1e-4, atol=1e-4)

    print("KERNEL_OK")
</pallas_src>

<mosaic_0001>
module attributes {stable_mosaic.version = 11 : i64} {
  func.func @_embed_kernel_doubling(%arg0: i32, %arg1: memref<1xi32, #tpu.memory_space<smem>>, %arg2: memref<6xf32, #tpu.memory_space<smem>>, %arg3: memref<2x1024xf32, #tpu.memory_space<vmem>>, %arg4: memref<13x2x1024xf32, #tpu.memory_space<vmem>>) attributes {dimension_semantics = [#tpu.dimension_semantics<parallel>], iteration_bounds = array<i64: 1>, scalar_prefetch = 1 : i64, scratch_operands = 0 : i64, tpu.core_type = #tpu.core_type<tc>, window_params = [{transform_indices = @transform_0, window_bounds = array<i64: 6>}, {transform_indices = @transform_1, window_bounds = array<i64: 2, 1024>}, {transform_indices = @transform_2, window_bounds = array<i64: 13, 2, 1024>}]} {
    %c0 = arith.constant 0 : index
    %c0_0 = arith.constant 0 : index
    %0 = vector.load %arg3[%c0, %c0_0] : memref<2x1024xf32, #tpu.memory_space<vmem>>, vector<2x1024xf32>
    %c0_1 = arith.constant 0 : index
    %c0_2 = arith.constant 0 : index
    %c0_3 = arith.constant 0 : index
    %1 = vector.load %arg4[%c0_1, %c0_2, %c0_3] : memref<13x2x1024xf32, #tpu.memory_space<vmem>>, vector<1x2x1024xf32>
    %2 = vector.shape_cast %1 : vector<1x2x1024xf32> to vector<2x1024xf32>
    %3 = vector.shape_cast %0 : vector<2x1024xf32> to vector<1x2x1024xf32>
    tpu.vector_store %arg4[%c0_1, %c0_2, %c0_3], %3 {strides = array<i32>} : memref<13x2x1024xf32, #tpu.memory_space<vmem>>, vector<1x2x1024xf32>,
    %cst = arith.constant 1.000000e+00 : f32
    %4 = vector.broadcast %cst : f32 to vector<2x1024xf32>
    %5 = arith.mulf %0, %4 : vector<2x1024xf32>
    %6 = math.sin %5 : vector<2x1024xf32>
    %7 = math.cos %5 : vector<2x1024xf32>
    %c0_4 = arith.constant 0 : index
    %8 = memref.load %arg2[%c0_4] : memref<6xf32, #tpu.memory_space<smem>>
    %9 = vector.broadcast %8 : f32 to vector<2x1024xf32>
    %10 = arith.mulf %6, %9 : vector<2x1024xf32>
    %c1 = arith.constant 1 : index
    %c0_5 = arith.constant 0 : index
    %c0_6 = arith.constant 0 : index
    %11 = vector.load %arg4[%c1, %c0_5, %c0_6] : memref<13x2x1024xf32, #tpu.memory_space<vmem>>, vector<1x2x1024xf32>
    %12 = vector.shape_cast %11 : vector<1x2x1024xf32> to vector<2x1024xf32>
    %13 = vector.shape_cast %10 : vector<2x1024xf32> to vector<1x2x1024xf32>
    tpu.vector_store %arg4[%c1, %c0_5, %c0_6], %13 {strides = array<i32>} : memref<13x2x1024xf32, #tpu.memory_space<vmem>>, vector<1x2x1024xf32>,
    %14 = vector.broadcast %8 : f32 to vector<2x1024xf32>
    %15 = arith.mulf %7, %14 : vector<2x1024xf32>
    %c2 = arith.constant 2 : index
    %c0_7 = arith.constant 0 : index
    %c0_8 = arith.constant 0 : index
    %16 = vector.load %arg4[%c2, %c0_7, %c0_8] : memref<13x2x1024xf32, #tpu.memory_space<vmem>>, vector<1x2x1024xf32>
    %17 = vector.shape_cast %16 : vector<1x2x1024xf32> to vector<2x1024xf32>
    %18 = vector.shape_cast %15 : vector<2x1024xf32> to vector<1x2x1024xf32>
    tpu.vector_store %arg4[%c2, %c0_7, %c0_8], %18 {strides = array<i32>} : memref<13x2x1024xf32, #tpu.memory_space<vmem>>, vector<1x2x1024xf32>,
    %cst_9 = arith.constant 2.000000e+00 : f32
    %19 = vector.broadcast %cst_9 : f32 to vector<2x1024xf32>
    %20 = arith.mulf %19, %6 : vector<2x1024xf32>
    %21 = arith.mulf %20, %7 : vector<2x1024xf32>
    %cst_10 = arith.constant 2.000000e+00 : f32
    %22 = vector.broadcast %cst_10 : f32 to vector<2x1024xf32>
    %23 = arith.mulf %22, %6 : vector<2x1024xf32>
    %24 = arith.mulf %23, %6 : vector<2x1024xf32>
    %cst_11 = arith.constant 1.000000e+00 : f32
    %25 = vector.broadcast %cst_11 : f32 to vector<2x1024xf32>
    %26 = arith.subf %25, %24 : vector<2x1024xf32>
    %c1_12 = arith.constant 1 : index
    %27 = memref.load %arg2[%c1_12] : memref<6xf32, #tpu.memory_space<smem>>
    %28 = vector.broadcast %27 : f32 to vector<2x1024xf32>
    %29 = arith.mulf %21, %28 : vector<2x1024xf32>
    %c3 = arith.constant 3 : index
    %c0_13 = arith.constant 0 : index
    %c0_14 = arith.constant 0 : index
    %30 = vector.load %arg4[%c3, %c0_13, %c0_14] : memref<13x2x1024xf32, #tpu.memory_space<vmem>>, vector<1x2x1024xf32>
    %31 = vector.shape_cast %30 : vector<1x2x1024xf32> to vector<2x1024xf32>
    %32 = vector.shape_cast %29 : vector<2x1024xf32> to vector<1x2x1024xf32>
    tpu.vector_store %arg4[%c3, %c0_13, %c0_14], %32 {strides = array<i32>} : memref<13x2x1024xf32, #tpu.memory_space<vmem>>, vector<1x2x1024xf32>,
    %33 = vector.broadcast %27 : f32 to vector<2x1024xf32>
    %34 = arith.mulf %26, %33 : vector<2x1024xf32>
    %c4 = arith.constant 4 : index
    %c0_15 = arith.constant 0 : index
    %c0_16 = arith.constant 0 : index
    %35 = vector.load %arg4[%c4, %c0_15, %c0_16] : memref<13x2x1024xf32, #tpu.memory_space<vmem>>, vector<1x2x1024xf32>
    %36 = vector.shape_cast %35 : vector<1x2x1024xf32> to vector<2x1024xf32>
    %37 = vector.shape_cast %34 : vector<2x1024xf32> to vector<1x2x1024xf32>
    tpu.vector_store %arg4[%c4, %c0_15, %c0_16], %37 {strides = array<i32>} : memref<13x2x1024xf32, #tpu.memory_space<vmem>>, vector<1x2x1024xf32>,
    %cst_17 = arith.constant 2.000000e+00 : f32
    %38 = vector.broadcast %cst_17 : f32 to vector<2x1024xf32>
    %39 = arith.mulf %38, %21 : vector<2x1024xf32>
    %40 = arith.mulf %39, %26 : vector<2x1024xf32>
    %cst_18 = arith.constant 2.000000e+00 : f32
    %41 = vector.broadcast %cst_18 : f32 to vector<2x1024xf32>
    %42 = arith.mulf %41, %21 : vector<2x1024xf32>
    %43 = arith.mulf %42, %21 : vector<2x1024xf32>
    %cst_19 = arith.constant 1.000000e+00 : f32
    %44 = vector.broadcast %cst_19 : f32 to vector<2x1024xf32>
    %45 = arith.subf %44, %43 : vector<2x1024xf32>
    %c2_20 = arith.constant 2 : index
    %46 = memref.load %arg2[%c2_20] : memref<6xf32, #tpu.memory_space<smem>>
    %47 = vector.broadcast %46 : f32 to vector<2x1024xf32>
    %48 = arith.mulf %40, %47 : vector<2x1024xf32>
    %c5 = arith.constant 5 : index
    %c0_21 = arith.constant 0 : index
    %c0_22 = arith.constant 0 : index
    %49 = vector.load %arg4[%c5, %c0_21, %c0_22] : memref<13x2x1024xf32, #tpu.memory_space<vmem>>, vector<1x2x1024xf32>
    %50 = vector.shape_cast %49 : vector<1x2x1024xf32> to vector<2x1024xf32>
    %51 = vector.shape_cast %48 : vector<2x1024xf32> to vector<1x2x1024xf32>
    tpu.vector_store %arg4[%c5, %c0_21, %c0_22], %51 {strides = array<i32>} : memref<13x2x1024xf32, #tpu.memory_space<vmem>>, vector<1x2x1024xf32>,
    %52 = vector.broadcast %46 : f32 to vector<2x1024xf32>
    %53 = arith.mulf %45, %52 : vector<2x1024xf32>
    %c6 = arith.constant 6 : index
    %c0_23 = arith.constant 0 : index
    %c0_24 = arith.constant 0 : index
    %54 = vector.load %arg4[%c6, %c0_23, %c0_24] : memref<13x2x1024xf32, #tpu.memory_space<vmem>>, vector<1x2x1024xf32>
    %55 = vector.shape_cast %54 : vector<1x2x1024xf32> to vector<2x1024xf32>
    %56 = vector.shape_cast %53 : vector<2x1024xf32> to vector<1x2x1024xf32>
    tpu.vector_store %arg4[%c6, %c0_23, %c0_24], %56 {strides = array<i32>} : memref<13x2x1024xf32, #tpu.memory_space<vmem>>, vector<1x2x1024xf32>,
    %cst_25 = arith.constant 2.000000e+00 : f32
    %57 = vector.broadcast %cst_25 : f32 to vector<2x1024xf32>
    %58 = arith.mulf %57, %40 : vector<2x1024xf32>
    %59 = arith.mulf %58, %45 : vector<2x1024xf32>
    %cst_26 = arith.constant 2.000000e+00 : f32
    %60 = vector.broadcast %cst_26 : f32 to vector<2x1024xf32>
    %61 = arith.mulf %60, %40 : vector<2x1024xf32>
    %62 = arith.mulf %61, %40 : vector<2x1024xf32>
    %cst_27 = arith.constant 1.000000e+00 : f32
    %63 = vector.broadcast %cst_27 : f32 to vector<2x1024xf32>
    %64 = arith.subf %63, %62 : vector<2x1024xf32>
    %c3_28 = arith.constant 3 : index
    %65 = memref.load %arg2[%c3_28] : memref<6xf32, #tpu.memory_space<smem>>
    %66 = vector.broadcast %65 : f32 to vector<2x1024xf32>
    %67 = arith.mulf %59, %66 : vector<2x1024xf32>
    %c7 = arith.constant 7 : index
    %c0_29 = arith.constant 0 : index
    %c0_30 = arith.constant 0 : index
    %68 = vector.load %arg4[%c7, %c0_29, %c0_30] : memref<13x2x1024xf32, #tpu.memory_space<vmem>>, vector<1x2x1024xf32>
    %69 = vector.shape_cast %68 : vector<1x2x1024xf32> to vector<2x1024xf32>
    %70 = vector.shape_cast %67 : vector<2x1024xf32> to vector<1x2x1024xf32>
    tpu.vector_store %arg4[%c7, %c0_29, %c0_30], %70 {strides = array<i32>} : memref<13x2x1024xf32, #tpu.memory_space<vmem>>, vector<1x2x1024xf32>,
    %71 = vector.broadcast %65 : f32 to vector<2x1024xf32>
    %72 = arith.mulf %64, %71 : vector<2x1024xf32>
    %c8 = arith.constant 8 : index
    %c0_31 = arith.constant 0 : index
    %c0_32 = arith.constant 0 : index
    %73 = vector.load %arg4[%c8, %c0_31, %c0_32] : memref<13x2x1024xf32, #tpu.memory_space<vmem>>, vector<1x2x1024xf32>
    %74 = vector.shape_cast %73 : vector<1x2x1024xf32> to vector<2x1024xf32>
    %75 = vector.shape_cast %72 : vector<2x1024xf32> to vector<1x2x1024xf32>
    tpu.vector_store %arg4[%c8, %c0_31, %c0_32], %75 {strides = array<i32>} : memref<13x2x1024xf32, #tpu.memory_space<vmem>>, vector<1x2x1024xf32>,
    %cst_33 = arith.constant 1.600000e+01 : f32
    %76 = vector.broadcast %cst_33 : f32 to vector<2x1024xf32>
    %77 = arith.mulf %0, %76 : vector<2x1024xf32>
    %78 = math.sin %77 : vector<2x1024xf32>
    %79 = math.cos %77 : vector<2x1024xf32>
    %c4_34 = arith.constant 4 : index
    %80 = memref.load %arg2[%c4_34] : memref<6xf32, #tpu.memory_space<smem>>
    %81 = vector.broadcast %80 : f32 to vector<2x1024xf32>
    %82 = arith.mulf %78, %81 : vector<2x1024xf32>
    %c9 = arith.constant 9 : index
    %c0_35 = arith.constant 0 : index
    %c0_36 = arith.constant 0 : index
    %83 = vector.load %arg4[%c9, %c0_35, %c0_36] : memref<13x2x1024xf32, #tpu.memory_space<vmem>>, vector<1x2x1024xf32>
    %84 = vector.shape_cast %83 : vector<1x2x1024xf32> to vector<2x1024xf32>
    %85 = vector.shape_cast %82 : vector<2x1024xf32> to vector<1x2x1024xf32>
    tpu.vector_store %arg4[%c9, %c0_35, %c0_36], %85 {strides = array<i32>} : memref<13x2x1024xf32, #tpu.memory_space<vmem>>, vector<1x2x1024xf32>,
    %86 = vector.broadcast %80 : f32 to vector<2x1024xf32>
    %87 = arith.mulf %79, %86 : vector<2x1024xf32>
    %c10 = arith.constant 10 : index
    %c0_37 = arith.constant 0 : index
    %c0_38 = arith.constant 0 : index
    %88 = vector.load %arg4[%c10, %c0_37, %c0_38] : memref<13x2x1024xf32, #tpu.memory_space<vmem>>, vector<1x2x1024xf32>
    %89 = vector.shape_cast %88 : vector<1x2x1024xf32> to vector<2x1024xf32>
    %90 = vector.shape_cast %87 : vector<2x1024xf32> to vector<1x2x1024xf32>
    tpu.vector_store %arg4[%c10, %c0_37, %c0_38], %90 {strides = array<i32>} : memref<13x2x1024xf32, #tpu.memory_space<vmem>>, vector<1x2x1024xf32>,
    %cst_39 = arith.constant 2.000000e+00 : f32
    %91 = vector.broadcast %cst_39 : f32 to vector<2x1024xf32>
    %92 = arith.mulf %91, %78 : vector<2x1024xf32>
    %93 = arith.mulf %92, %79 : vector<2x1024xf32>
    %cst_40 = arith.constant 2.000000e+00 : f32
    %94 = vector.broadcast %cst_40 : f32 to vector<2x1024xf32>
    %95 = arith.mulf %94, %78 : vector<2x1024xf32>
    %96 = arith.mulf %95, %78 : vector<2x1024xf32>
    %cst_41 = arith.constant 1.000000e+00 : f32
    %97 = vector.broadcast %cst_41 : f32 to vector<2x1024xf32>
    %98 = arith.subf %97, %96 : vector<2x1024xf32>
    %c5_42 = arith.constant 5 : index
    %99 = memref.load %arg2[%c5_42] : memref<6xf32, #tpu.memory_space<smem>>
    %100 = vector.broadcast %99 : f32 to vector<2x1024xf32>
    %101 = arith.mulf %93, %100 : vector<2x1024xf32>
    %c11 = arith.constant 11 : index
    %c0_43 = arith.constant 0 : index
    %c0_44 = arith.constant 0 : index
    %102 = vector.load %arg4[%c11, %c0_43, %c0_44] : memref<13x2x1024xf32, #tpu.memory_space<vmem>>, vector<1x2x1024xf32>
    %103 = vector.shape_cast %102 : vector<1x2x1024xf32> to vector<2x1024xf32>
    %104 = vector.shape_cast %101 : vector<2x1024xf32> to vector<1x2x1024xf32>
    tpu.vector_store %arg4[%c11, %c0_43, %c0_44], %104 {strides = array<i32>} : memref<13x2x1024xf32, #tpu.memory_space<vmem>>, vector<1x2x1024xf32>,
    %105 = vector.broadcast %99 : f32 to vector<2x1024xf32>
    %106 = arith.mulf %98, %105 : vector<2x1024xf32>
    %c12 = arith.constant 12 : index
    %c0_45 = arith.constant 0 : index
    %c0_46 = arith.constant 0 : index
    %107 = vector.load %arg4[%c12, %c0_45, %c0_46] : memref<13x2x1024xf32, #tpu.memory_space<vmem>>, vector<1x2x1024xf32>
    %108 = vector.shape_cast %107 : vector<1x2x1024xf32> to vector<2x1024xf32>
    %109 = vector.shape_cast %106 : vector<2x1024xf32> to vector<1x2x1024xf32>
    tpu.vector_store %arg4[%c12, %c0_45, %c0_46], %109 {strides = array<i32>} : memref<13x2x1024xf32, #tpu.memory_space<vmem>>, vector<1x2x1024xf32>,
    return
  }
  func.func @transform_0(%arg0: i32, %arg1: memref<1xi32, #tpu.memory_space<smem>>) -> i32 {
    %c0_i32 = arith.constant 0 : i32
    %c0_i32_0 = arith.constant 0 : i32
    return %c0_i32 : i32
  }
  func.func @transform_1(%arg0: i32, %arg1: memref<1xi32, #tpu.memory_space<smem>>) -> (i32, i32) {
    %c0_i32 = arith.constant 0 : i32
    %c0_i32_0 = arith.constant 0 : i32
    return %arg0, %c0_i32 : i32, i32
  }
  func.func @transform_2(%arg0: i32, %arg1: memref<1xi32, #tpu.memory_space<smem>>) -> (i32, i32, i32) {
    %c0_i32 = arith.constant 0 : i32
    %c0_i32_0 = arith.constant 0 : i32
    %c0_i32_1 = arith.constant 0 : i32
    return %c0_i32, %arg0, %c0_i32_0 : i32, i32, i32
  }
}

</mosaic_0001>

<bundles_post_ra>
// kernel: tpu_custom_call.1
= control target key start
LH: loop header
LB: loop body
LE: loop exit
PB: predicated region body
PF: predicated region fallthrough
CT: control target
= control target key end

     0   :  { %9 = vsyncpa [#allocation7], 0  ;;  %s1555_s0 = inlined_call_operand.<no memory space> [shape: s32[1], index: 0, kind: input, shape index: {}]   ;;  %s1556_s1 = inlined_call_operand.vmem [shape: f32[6], index: 1, kind: input, shape index: {}]   ;;  %s1557_s2 = inlined_call_operand.hbm [shape: f32[2,1024], index: 2, kind: input, shape index: {}]   ;;  %s1558_s3 = inlined_call_operand.hbm [shape: f32[13,2,1024], index: 3, kind: output, shape index: {}]  }
   0x1   :  { %10 = vsyncpa [#allocation5], 0 }
   0x2   :  { %11 = vsyncpa [#allocation6], 0  ;;  %s18_s14 = sshll.u32 %s1556_s1, 4  ;;  %s19_s14 = int_to_ptr.vmem [resolvable:$true] %s18_s14 }
   0x3   :  { %s1075_s15 = scalar_lea.vmem %s19_s14, 16  ;;  %p1080_p1 = scmp.lt.s32.totalorder %s19_s14, %s19_s14 }
   0x4   :  { %p1076_p0 = scmp.ne.s32.totalorder %s19_s14, %s1075_s15  ;;  %p1081_p2 = scmp.lt.s32.totalorder %s1075_s15, %s1075_s15 }
   0x6   :  { %p1082_p3 = por %p1081_p2, %p1080_p1 }
   0x8   :  { %p1083_p4 = pnand %p1082_p3, %p1076_p0 }
   0xa   :  { %1086 = shalt.err (!%p1083_p4)
}
   0xb   :  { %s1133_s0 = smov [#allocation4]   ;;  %s1134_s16 = smov [#allocation8]  }
   0xc   :  { %21 = dma.vmem_to_smem %s19_s14, 16, %s1133_s0, [#allocation7]  }
   0xd   :  { %s28_s17 = sshll.u32 %s1134_s16, 4  ;;  %s29_s17 = int_to_ptr.vmem [resolvable:$true] %s28_s17 }
   0xe   :  { %s1095_s18 = scalar_lea.vmem %s29_s17, 256  ;;  %p1100_p6 = scmp.lt.s32.totalorder %s29_s17, %s29_s17 }
   0xf   :  { %p1096_p5 = scmp.ne.s32.totalorder %s29_s17, %s1095_s18  ;;  %p1101_p7 = scmp.lt.s32.totalorder %s1095_s18, %s1095_s18 }
  0x11   :  { %p1102_p8 = por %p1101_p7, %p1100_p6 }
  0x13   :  { %p1103_p9 = pnand %p1102_p8, %p1096_p5 }
  0x15   :  { %1106 = shalt.err (!%p1103_p9)
}
  0x16   :  { %31 = dma.hbm_to_vmem [thread:$0]  %s1557_s2, 256, %s29_s17, [#allocation5]  }
  0x17   :  { %1127 = dma.done.wait [#allocation7], 16  }
  0x18   :  { %1128 = vsyncadd [#allocation7], 4294967280 }
  0x19   :  { %1129 = dma.done.wait [#allocation5], 256  }
  0x1a   :  { %1130 = vsyncadd [#allocation5], 4294967040 }
  0x1b   :  { %38 = sfence }
  0x1c   :  { %v1170_v0 = vld [vmem:[#allocation8] sm:$0xff]  ;;  %v1172_v1 = vld [vmem:[#allocation8 + $0x8] sm:$0xff]  ;;  %v1135_v26 = vmov 683565275   ;;  %v1136_v28 = vmov 2475754826  }
  0x1d   :  { %41 = vst [vmem:[#allocation9] sm:$0xff] %v1170_v0  ;;  %v46_v2 = vand.u32 2139095040, %v1170_v0  ;;  %42 = vst [vmem:[#allocation9 + $0x8] sm:$0xff] %v1172_v1  ;;  %v150_v3 = vand.u32 2139095040, %v1172_v1  ;;  %v43_v4 = vand.u32 2147483647, %v1170_v0 }
  0x1e   :  { %v147_v8 = vand.u32 2147483647, %v1172_v1  ;;  %v1185_v16 = vmul.f32 16.0, %v1170_v0  ;;  %v1137_v32 = vmov 2131351028   ;;  %vm45_vm13 = vcmp.lt.s32.totalorder %v1170_v0, 0 }
  0x1f   :  { %v47_v5 = vshrl.u32 %v46_v2, 23  ;;  %v151_v6 = vshrl.u32 %v150_v3, 23  ;;  %v50_v7 = vand.u32 8388607, %v43_v4  ;;  %v1138_v34 = vmov 2102212464  }
  0x20   :  { %v154_v11 = vand.u32 8388607, %v147_v8  ;;  %v534_v30 = vand.u32 2139095040, %v1185_v16  ;;  %v1139_v36 = vmov 920167782   ;;  %s1312_s2 = sld [smem:[#allocation4]] }
  0x21   :  { %v995_v9 = vadd.s32 4294967169, %v47_v5  ;;  %v999_v10 = vadd.s32 4294967169, %v151_v6  ;;  %v51_v14 = vor.u32 8388608, %v50_v7  ;;  %v1140_v43 = vmov 1326507024   ;;  %s1318_s20 = sld [smem:[#allocation4 + $0x1]] }
  0x22   :  { %v155_v15 = vor.u32 8388608, %v154_v11  ;;  %vm1274_vm14 = vcmp.le.f32.partialorder %v43_v4, 0.7853982  ;;  %s1323_s21 = sld [smem:[#allocation4 + $0x2]]  ;;  %s1141_s25 = smov [#allocation9]  }
  0x23   :  { %v53_v12 = vadd.s32 1, %v995_v9  ;;  %v157_v13 = vadd.s32 1, %v999_v10  ;;  %v1189_v23 = vshll.u32 %v51_v14, 8  ;;  %s1330_s22 = sld [smem:[#allocation4 + $0x3]]  ;;  %s982_s26 = sshll.u32 %s1141_s25, 4  ;;  %s983_s26 = int_to_ptr.vmem [resolvable:$true] %s982_s26 }
  0x24   :  { %v1191_v24 = vshll.u32 %v155_v15, 8  ;;  %s1030_s23 = sld [smem:[#allocation4 + $0x4]]  ;;  %s1107_s27 = scalar_lea.vmem %s983_s26, 3328 }
  0x25   :  { %vm54_vm0 = vcmp.gt.s32.totalorder %v53_v12, 0  ;;  %vm158_vm1 = vcmp.gt.s32.totalorder %v157_v13, 0  ;;  %s1031_s24 = sld [smem:[#allocation4 + $0x5]]  ;;  %p1108_p10 = scmp.ne.s32.totalorder %s983_s26, %s1107_s27 }
  0x26   :  { %v55_v17 = vsel %vm54_vm0, %v53_v12, 0  ;;  %v159_v18 = vsel %vm158_vm1, %v157_v13, 0  ;;  %vm149_vm0 = vcmp.lt.s32.totalorder %v1172_v1, 0  ;;  %p1112_p11 = scmp.lt.s32.totalorder %s983_s26, %s983_s26  ;;  %p1113_p12 = scmp.lt.s32.totalorder %s1107_s27, %s1107_s27 }
  0x27   :  { %v57_v19 = vand.u32 31, %v55_v17  ;;  %v161_v20 = vand.u32 31, %v159_v18  ;;  %v56_v21 = vshrl.u32 %v55_v17, 5  ;;  %v1187_v22 = vshrl.u32 %v159_v18, 5 }
  0x28   :  { %p1114_p13 = por %p1113_p12, %p1112_p11 }
  0x29   :  { %v58_v25 = vsub.s32 32, %v57_v19  ;;  %v60_v27 = vshll.u32 %v1135_v26, %v57_v19  ;;  %v63_v29 = vshll.u32 %v1136_v28, %v57_v19  ;;  %v162_v31 = vsub.s32 32, %v161_v20 }
  0x2a   :  { %v66_v33 = vshll.u32 %v1137_v32, %v57_v19  ;;  %v69_v35 = vshll.u32 %v1138_v34, %v57_v19  ;;  %v72_v37 = vshll.u32 %v1139_v36, %v57_v19  ;;  %vm75_vm2 = vcmp.lt.s32.totalorder %v56_v21, 1  ;;  %p1115_p0 = pnand %p1114_p13, %p1108_p10 }
  0x2b   :  { %v59_v38 = vshrl.u32 %v1135_v26, %v58_v25  ;;  %v61_v39 = vshrl.u32 %v1136_v28, %v58_v25  ;;  %v64_v40 = vshrl.u32 %v1137_v32, %v58_v25  ;;  %v67_v41 = vshrl.u32 %v1138_v34, %v58_v25 }
  0x2c   :  { %v70_v42 = vshrl.u32 %v1139_v36, %v58_v25  ;;  %v73_v44 = vshrl.u32 %v1140_v43, %v58_v25  ;;  %vm76_vm3 = vcmp.lt.s32.totalorder %v56_v21, 2  ;;  %vm78_vm4 = vcmp.lt.s32.totalorder %v56_v21, 4 }
  0x2d   :  { %v62_v45 = vor.u32 %v61_v39, %v60_v27  ;;  %v65_v46 = vor.u32 %v64_v40, %v63_v29  ;;  %v68_v47 = vor.u32 %v67_v41, %v66_v33  ;;  %vm77_vm5 = vcmp.lt.s32.totalorder %v56_v21, 3 }
  0x2e   :  { %v71_v48 = vor.u32 %v70_v42, %v69_v35  ;;  %v74_v49 = vor.u32 %v73_v44, %v72_v37  ;;  %v164_v50 = vshll.u32 %v1135_v26, %v161_v20  ;;  %v165_v58 = vshrl.u32 %v1136_v28, %v162_v31 }
  0x2f   :  { %v79_v51 = vsel %vm75_vm2, %v59_v38, %v62_v45  ;;  %v80_v52 = vsel %vm78_vm4, %v68_v47, 2102212464  ;;  %v83_v53 = vsel %vm75_vm2, %v62_v45, %v65_v46  ;;  %v87_v54 = vsel %vm75_vm2, %v65_v46, %v68_v47 }
  0x30   :  { %v81_v55 = vsel %vm77_vm5, %v65_v46, %v80_v52  ;;  %v84_v56 = vsel %vm78_vm4, %v71_v48, 920167782  ;;  %v88_v57 = vsel %vm78_vm4, %v74_v49, 1326507024  ;;  %v163_v62 = vshrl.u32 %v1135_v26, %v162_v31 }
  0x31   :  { %v82_v59 = vsel %vm76_vm3, %v79_v51, %v81_v55  ;;  %v85_v60 = vsel %vm77_vm5, %v68_v47, %v84_v56  ;;  %v89_v61 = vsel %vm77_vm5, %v71_v48, %v88_v57  ;;  %v166_v3 = vor.u32 %v165_v58, %v164_v50 }
  0x32   :  { %v86_v63 = vsel %vm76_vm3, %v83_v53, %v85_v60  ;;  %v90_v2 = vsel %vm76_vm3, %v87_v54, %v89_v61  ;;  %v167_v5 = vshll.u32 %v1136_v28, %v161_v20  ;;  %v168_v11 = vshrl.u32 %v1137_v32, %v162_v31 }
  0x33   :  { %v1213_v6 = vmul.u32.u64.low %v1189_v23, %v90_v2  ;;  %v1214_v7 = vmul.u32.u64.high %v1189_v23, %v90_v2, %v1213_v6  ;;  %v1217_v9 = vmul.u32.u64.low %v1189_v23, %v86_v63  ;;  %v1218_v10 = vmul.u32.u64.high %v1189_v23, %v86_v63, %v1217_v9 }
  0x34   :  { %v170_v12 = vshll.u32 %v1137_v32, %v161_v20  ;;  %v171_v13 = vshrl.u32 %v1138_v34, %v162_v31  ;;  %v173_v14 = vshll.u32 %v1138_v34, %v161_v20  ;;  %v174_v15 = vshrl.u32 %v1139_v36, %v162_v31 }
  0x35   :  { %v176_v17 = vshll.u32 %v1139_v36, %v161_v20  ;;  %v177_v18 = vshrl.u32 %v1140_v43, %v162_v31  ;;  %vm179_vm6 = vcmp.lt.s32.totalorder %v1187_v22, 1  ;;  %v98_v19 = vmul.u32 %v1189_v23, %v82_v59 }
  0x36   :  { %v169_v21 = vor.u32 %v168_v11, %v167_v5  ;;  %v172_v25 = vor.u32 %v171_v13, %v170_v12  ;;  %vm180_vm7 = vcmp.lt.s32.totalorder %v1187_v22, 2  ;;  %vm100_vm8 = vc.u32 %v1214_v7, %v1217_v9 }
  0x37   :  { %v101_v27 = vadd.s32 1, %v1218_v10  ;;  %v175_v29 = vor.u32 %v174_v15, %v173_v14  ;;  %vm181_vm9 = vcmp.lt.s32.totalorder %v1187_v22, 3  ;;  %v178_v33 = vor.u32 %v177_v18, %v176_v17 }
  0x38   :  { %vm182_vm10 = vcmp.lt.s32.totalorder %v1187_v22, 4  ;;  %v183_v20 = vsel %vm179_vm6, %v163_v62, %v166_v3  ;;  %v187_v23 = vsel %vm179_vm6, %v166_v3, %v169_v21  ;;  %v191_v38 = vsel %vm179_vm6, %v169_v21, %v172_v25 }
  0x39   :  { %v102_v31 = vsel %vm100_vm8, %v101_v27, %v1218_v10  ;;  %v184_v35 = vsel %vm182_vm10, %v172_v25, 2102212464  ;;  %v188_v37 = vsel %vm182_vm10, %v175_v29, 920167782  ;;  %v192_v42 = vsel %vm182_vm10, %v178_v33, 1326507024 }
  0x3a   :  { %v103_v39 = vadd.s32 %v102_v31, %v98_v19  ;;  %v185_v40 = vsel %vm181_vm9, %v169_v21, %v184_v35  ;;  %v189_v41 = vsel %vm181_vm9, %v172_v25, %v188_v37  ;;  %v193_v46 = vsel %vm181_vm9, %v175_v29, %v192_v42 }
  0x3b   :  { %v186_v44 = vsel %vm180_vm7, %v183_v20, %v185_v40  ;;  %v190_v45 = vsel %vm180_vm7, %v187_v23, %v189_v41  ;;  %v194_v48 = vsel %vm180_vm7, %v191_v38, %v193_v46  ;;  %v535_v53 = vshrl.u32 %v534_v30, 23 }
  0x3c   :  { %v104_v47 = vadd.s32 536870912, %v103_v39  ;;  %v1250_v49 = vmul.u32.u64.low %v1191_v24, %v190_v45  ;;  %v1251_v50 = vmul.u32.u64.high %v1191_v24, %v190_v45, %v1250_v49  ;;  %v202_v55 = vmul.u32 %v1191_v24, %v186_v44 }
  0x3d   :  { %v1254_v51 = vmul.u32.u64.low %v1191_v24, %v194_v48  ;;  %v1255_v52 = vmul.u32.u64.high %v1191_v24, %v194_v48, %v1254_v51  ;;  %v531_v56 = vand.u32 2147483647, %v1185_v16  ;;  %v1014_v57 = vadd.s32 4294967169, %v535_v53 }
  0x3e   :  { %v105_v54 = vshrl.u32 %v104_v47, 30  ;;  %v205_v22 = vadd.s32 1, %v1251_v50  ;;  %v1267_v24 = vmul.f32 16.0, %v1172_v1  ;;  %v99_v25 = vadd.s32 %v1217_v9, %v1214_v7 }
  0x3f   :  { %vm204_vm11 = vc.u32 %v1255_v52, %v1250_v49  ;;  %v541_v60 = vadd.s32 1, %v1014_v57  ;;  %v538_v30 = vand.u32 8388607, %v531_v56  ;;  %v203_v27 = vadd.s32 %v1250_v49, %v1255_v52 }
  0x40   :  { %v106_v58 = vshll.u32 %v105_v54, 30  ;;  %v129_v59 = vsub.s32 4, %v105_v54  ;;  %v206_v62 = vsel %vm204_vm11, %v205_v22, %v1251_v50  ;;  %v638_v15 = vand.u32 2139095040, %v1267_v24 }
  0x41   :  { %v207_v63 = vadd.s32 %v206_v62, %v202_v55  ;;  %vm542_vm12 = vcmp.gt.s32.totalorder %v541_v60, 0  ;;  %v539_v14 = vor.u32 8388608, %v538_v30  ;;  %vm1354_vm6 = vcmp.le.f32.partialorder %v147_v8, 0.7853982 }
  0x42   :  { %v107_v61 = vsub.s32 %v103_v39, %v106_v58  ;;  %v543_v3 = vsel %vm542_vm12, %v541_v60, 0  ;;  %v130_v5 = vsel %vm45_vm13, %v129_v59, %v105_v54  ;;  %v639_v23 = vshrl.u32 %v638_v15, 23 }
  0x43   :  { %v208_v6 = vadd.s32 536870912, %v207_v63  ;;  %v545_v10 = vand.u32 31, %v543_v3  ;;  %v1283_v18 = vsel %vm1274_vm14, 0, %v130_v5  ;;  %v1294_v20 = vshll.u32 %v539_v14, 8 }
  0x44   :  { %v109_v2 = vsub.s32 0, %v107_v61  ;;  %v1290_v29 = vadd.s32 3, %v1283_v18  ;;  %v544_v46 = vshrl.u32 %v543_v3, 5  ;;  %v1018_v48 = vadd.s32 4294967169, %v639_v23 }
  0x45   :  { %v1278_v13 = vshrl.u32 %v208_v6, 30  ;;  %v546_v19 = vsub.s32 32, %v545_v10  ;;  %v548_v31 = vshll.u32 %v1135_v26, %v545_v10  ;;  %v551_v37 = vshll.u32 %v1136_v28, %v545_v10 }
  0x46   :  { %v996_v11 = vmin.u32 %v109_v2, %v107_v61  ;;  %v554_v39 = vshll.u32 %v1137_v32, %v545_v10  ;;  %v557_v47 = vshll.u32 %v1138_v34, %v545_v10  ;;  %v560_v60 = vshll.u32 %v1139_v36, %v545_v10 }
  0x47   :  { %v210_v21 = vshll.u32 %v1278_v13, 30  ;;  %v549_v35 = vshrl.u32 %v1136_v28, %v546_v19  ;;  %v552_v9 = vshrl.u32 %v1137_v32, %v546_v19  ;;  %v555_v44 = vshrl.u32 %v1138_v34, %v546_v19 }
  0x48   :  { %v111_v17 = vclz %v996_v11  ;;  %v233_v51 = vsub.s32 4, %v1278_v13  ;;  %v558_v52 = vshrl.u32 %v1139_v36, %v546_v19  ;;  %v547_v54 = vshrl.u32 %v1135_v26, %v546_v19 }
  0x49   :  { %v1292_v33 = vsub.s32 %v207_v63, %v210_v21  ;;  %v550_v55 = vor.u32 %v549_v35, %v548_v31  ;;  %v553_v57 = vor.u32 %v552_v9, %v551_v37  ;;  %v556_v59 = vor.u32 %v555_v44, %v554_v39 }
  0x4a   :  { %v997_v4 = vadd.s32 4294967294, %v111_v17  ;;  %v559_v62 = vor.u32 %v558_v52, %v557_v47  ;;  %v561_v63 = vshrl.u32 %v1140_v43, %v546_v19  ;;  %vm563_vm1 = vcmp.lt.s32.totalorder %v544_v46, 1 }
  0x4b   :  { %v213_v7 = vsub.s32 0, %v1292_v33  ;;  %vm564_vm2 = vcmp.lt.s32.totalorder %v544_v46, 2  ;;  %vm566_vm3 = vcmp.lt.s32.totalorder %v544_v46, 4  ;;  %vm565_vm5 = vcmp.lt.s32.totalorder %v544_v46, 3 }
  0x4c   :  { %vm998_vm15 = vcmp.lt.s32.totalorder %v997_v4, 0  ;;  %v562_v3 = vor.u32 %v561_v63, %v560_v60  ;;  %v568_v5 = vsel %vm566_vm3, %v556_v59, 2102212464  ;;  %v567_v10 = vsel %vm563_vm1, %v547_v54, %v550_v55 }
  0x4d   :  { %v114_v38 = vsel %vm998_vm15, 0, %v997_v4  ;;  %v1000_v45 = vmin.u32 %v213_v7, %v1292_v33  ;;  %v569_v14 = vsel %vm565_vm5, %v553_v57, %v568_v5  ;;  %v571_v21 = vsel %vm563_vm1, %v550_v55, %v553_v57 }
  0x4e   :  { %v115_v40 = vsub.s32 32, %v114_v38  ;;  %v116_v41 = vshll.u32 %v107_v61, %v114_v38  ;;  %v119_v42 = vsub.s32 4294967266, %v114_v38  ;;  %v572_v4 = vsel %vm566_vm3, %v559_v62, 920167782 }
  0x4f   :  { %v215_v53 = vclz %v1000_v45  ;;  %v575_v23 = vsel %vm563_vm1, %v553_v57, %v556_v59  ;;  %v576_v31 = vsel %vm566_vm3, %v562_v3, 1326507024  ;;  %v573_v38 = vsel %vm565_vm5, %v556_v59, %v572_v4 }
  0x50   :  { %v117_v49 = vshrl.u32 %v99_v25, %v115_v40  ;;  %v120_v50 = vadd.s32 127, %v119_v42  ;;  %v234_v9 = vsel %vm149_vm0, %v233_v51, %v1278_v13  ;;  %v574_v39 = vsel %vm564_vm2, %v571_v21, %v573_v38 }
  0x51   :  { %v1001_v61 = vadd.s32 4294967294, %v215_v53  ;;  %v570_v47 = vsel %vm564_vm2, %v567_v10, %v569_v14  ;;  %v645_v53 = vadd.s32 1, %v1018_v48  ;;  %v1350_v54 = vstv %s1312_s2 }
  0x52   :  { %v118_v58 = vor.u32 %v117_v49, %v116_v41  ;;  %v121_v22 = vshll.u32 %v120_v50, 23  ;;  %v1342_v13 = vmul.u32.u64.low %v1294_v20, %v574_v39  ;;  %v1343_v49 = vmul.u32.u64.high %v1294_v20, %v574_v39, %v1342_v13 }
  0x53   :  { %vm1002_vm4 = vcmp.lt.s32.totalorder %v1001_v61, 0  ;;  %v1359_v55 = vand.u32 3, %v1283_v18  ;;  %v586_v57 = vmul.u32 %v1294_v20, %v570_v47  ;;  %v236_v48 = vsel %vm1354_vm6, 0, %v234_v9 }
  0x54   :  { %v122_v30 = vor.u32 4788187, %v121_v22  ;;  %v125_v2 = vcvt.s32.f32 %v118_v58  ;;  %v218_v11 = vsel %vm1002_vm4, 0, %v1001_v61  ;;  %v1367_v58 = vstv %s1318_s20 }
  0x55   :  { %v219_v15 = vsub.s32 32, %v218_v11  ;;  %v220_v17 = vshll.u32 %v1292_v33, %v218_v11  ;;  %v223_v19 = vsub.s32 4294967266, %v218_v11  ;;  %v577_v33 = vsel %vm565_vm5, %v559_v62, %v576_v31 }
  0x56   :  { %v123_v6 = vand.u32 2147483647, %v122_v30  ;;  %v578_v40 = vsel %vm564_vm2, %v575_v23, %v577_v33  ;;  %v589_v8 = vadd.s32 1, %v1343_v49  ;;  %vm646_vm8 = vcmp.gt.s32.totalorder %v645_v53, 0 }
  0x57   :  { %v221_v35 = vshrl.u32 %v203_v27, %v219_v15  ;;  %v224_v37 = vadd.s32 127, %v223_v19  ;;  %v1335_v42 = vmul.u32.u64.low %v1294_v20, %v578_v40  ;;  %v1336_v44 = vmul.u32.u64.high %v1294_v20, %v578_v40, %v1335_v42 }
  0x58   :  { %v126_v25 = vmul.f32 %v125_v2, %v123_v6  ;;  %v1371_v22 = vand.u32 3, %v1290_v29  ;;  %v1374_v59 = vstv %s1323_s21  ;;  %v647_v60 = vsel %vm646_vm8, %v645_v53, 0 }
  0x59   :  { %v222_v27 = vor.u32 %v221_v35, %v220_v17  ;;  %v225_v41 = vshll.u32 %v224_v37, 23  ;;  %vm588_vm7 = vc.u32 %v1336_v44, %v1342_v13  ;;  %v1377_v61 = vstv %s1330_s22 }
  0x5a   :  { %v127_v7 = vxor.u32 2147483648, %v126_v25  ;;  %v590_v20 = vsel %vm588_vm7, %v589_v8, %v1343_v49  ;;  %v635_v62 = vand.u32 2147483647, %v1267_v24  ;;  %v649_v63 = vand.u32 31, %v647_v60 }
  0x5b   :  { %v226_v51 = vor.u32 4788187, %v225_v41  ;;  %v229_v52 = vcvt.s32.f32 %v222_v27  ;;  %v240_v2 = vadd.s32 3, %v236_v48  ;;  %vm349_vm9 = vcmp.eq.s32.totalorder %v1359_v55, 2 }
  0x5c   :  { %v128_v45 = vsel %vm45_vm13, %v127_v7, %v126_v25  ;;  %v591_v3 = vadd.s32 %v590_v20, %v586_v57  ;;  %v1382_v5 = vshrl.u32 %v647_v60, 5  ;;  %vm346_vm10 = vcmp.eq.s32.totalorder %v1359_v55, 0 }
  0x5d   :  { %v131_v50 = vsel %vm1274_vm14, %v1170_v0, %v128_v45  ;;  %v227_v12 = vand.u32 2147483647, %v226_v51  ;;  %v650_v29 = vsub.s32 32, %v649_v63  ;;  %v652_v6 = vshll.u32 %v1135_v26, %v649_v63 }
  0x5e   :  { %1059 = vcosq.f32 %v131_v50  ;;  %v655_v11 = vshll.u32 %v1136_v28, %v649_v63  ;;  %v658_v10 = vshll.u32 %v1137_v32, %v649_v63  ;;  %vm138_vm11 = vcmp.lt.s32.totalorder %v1371_v22, 2 }
  0x5f   :  { %1061 = vsinq.f32 %v131_v50  ;;  %v230_v18 = vmul.f32 %v229_v52, %v227_v12  ;;  %vm345_vm12 = vcmp.lt.s32.totalorder %v1359_v55, 2  ;;  %v592_v15 = vadd.s32 536870912, %v591_v3 }
  0x60   :  { %v661_v17 = vshll.u32 %v1138_v34, %v649_v63  ;;  %v1394_v19 = vshll.u32 %v1139_v36, %v649_v63  ;;  %vm135_vm13 = vweird.f32 %v1170_v0  ;;  %v651_v25 = vshrl.u32 %v1135_v26, %v650_v29 }
  0x61   :  { %v231_v30 = vxor.u32 2147483648, %v230_v18  ;;  %v653_v4 = vshrl.u32 %v1136_v28, %v650_v29  ;;  %v656_v23 = vshrl.u32 %v1137_v32, %v650_v29  ;;  %v1403_v31 = vshrl.u32 %v592_v15, 30 }
  0x62   :  { %v659_v35 = vshrl.u32 %v1138_v34, %v650_v29  ;;  %v662_v37 = vshrl.u32 %v1139_v36, %v650_v29  ;;  %v665_v7 = vshrl.u32 %v1140_v43, %v650_v29  ;;  %v1408_v9 = vand.u32 3, %v236_v48 }
  0x63   :  { %v232_v14 = vsel %vm149_vm0, %v231_v30, %v230_v18  ;;  %v654_v38 = vor.u32 %v653_v4, %v652_v6  ;;  %v657_v33 = vor.u32 %v656_v23, %v655_v11  ;;  %v594_v26 = vshll.u32 %v1403_v31, 30 }
  0x64   :  { %v235_v21 = vsel %vm1354_vm6, %v1172_v1, %v232_v14  ;;  %v660_v39 = vor.u32 %v659_v35, %v658_v10  ;;  %v663_v28 = vor.u32 %v662_v37, %v661_v17  ;;  %vm139_vm14 = vcmp.eq.s32.totalorder %v1371_v22, 0 }
  0x65   :  { %1063 = vcosq.f32 %v235_v21  ;;  %vm142_vm15 = vcmp.eq.s32.totalorder %v1371_v22, 2  ;;  %v666_v32 = vor.u32 %v665_v7, %v1394_v19  ;;  %vm667_vm0 = vcmp.lt.s32.totalorder %v1382_v5, 1 }
  0x66   :  { %1065 = vsinq.f32 %v235_v21  ;;  %v1415_v36 = vand.u32 3, %v240_v2  ;;  %v1417_v40 = vsub.s32 %v591_v3, %v594_v26  ;;  %vm670_vm1 = vcmp.lt.s32.totalorder %v1382_v5, 4 }
  0x67   :  { %v671_v43 = vsel %vm667_vm0, %v651_v25, %v654_v38  ;;  %vm669_vm2 = vcmp.lt.s32.totalorder %v1382_v5, 3  ;;  %v672_v42 = vsel %vm670_vm1, %v660_v39, 2102212464  ;;  %v675_v45 = vsel %vm667_vm0, %v654_v38, %v657_v33 }
  0x68   :  { %vm449_vm3 = vcmp.eq.s32.totalorder %v1408_v9, 0  ;;  %v597_v49 = vsub.s32 0, %v1417_v40  ;;  %vm668_vm4 = vcmp.lt.s32.totalorder %v1382_v5, 2  ;;  %v673_v50 = vsel %vm669_vm2, %v657_v33, %v672_v42 }
  0x69   :  { %vm448_vm5 = vcmp.lt.s32.totalorder %v1408_v9, 2  ;;  %v1439_v53 = vsel %vm668_vm4, %v671_v43, %v673_v50  ;;  %v676_v46 = vsel %vm670_vm1, %v663_v28, 920167782  ;;  %vm239_vm6 = vweird.f32 %v1172_v1 }
  0x6a   :  { %vm452_vm7 = vcmp.eq.s32.totalorder %v1408_v9, 2  ;;  %v1015_v48 = vmin.u32 %v597_v49, %v1417_v40  ;;  %v677_v60 = vsel %vm669_vm2, %v660_v39, %v676_v46  ;;  %v679_v20 = vsel %vm667_vm0, %v657_v33, %v660_v39 }
  0x6b   :  { %v1060_v34 = vpop.eup %1059  ;;  %v642_v22 = vand.u32 8388607, %v635_v62  ;;  %vm242_vm8 = vcmp.lt.s32.totalorder %v1415_v36, 2  ;;  %v1470_v11 = vsel %vm668_vm4, %v675_v45, %v677_v60  ;;  %v680_v0 = vsel %vm670_vm1, %v666_v32, 1326507024 }
  0x6c   :  { %v1062_v27 = vpop.eup %1061  ;;  %v143_v41 = vxor.u32 2147483648, %v1060_v34  ;;  %v599_v2 = vclz %v1015_v48  ;;  %v681_v17 = vsel %vm669_vm2, %v663_v28, %v680_v0  ;;  %v587_v26 = vadd.s32 %v1342_v13, %v1336_v44 }
  0x6d   :  { %v140_v47 = vxor.u32 2147483648, %v1062_v27  ;;  %v643_v25 = vor.u32 8388608, %v642_v22  ;;  %v1479_v4 = vsel %vm668_vm4, %v679_v20, %v681_v17 }
  0x6e   :  { %v144_v51 = vsel %vm142_vm15, %v143_v41, %v1062_v27  ;;  %v351_v52 = vsel %vm349_vm9, %v143_v41, %v1062_v27  ;;  %vm243_vm9 = vcmp.eq.s32.totalorder %v1415_v36, 0  ;;  %v1016_v6 = vadd.s32 4294967294, %v599_v2 }
  0x6f   :  { %v141_v12 = vsel %vm139_vm14, %v1060_v34, %v140_v47  ;;  %v348_v57 = vsel %vm346_vm10, %v1060_v34, %v140_v47  ;;  %vm246_vm10 = vcmp.eq.s32.totalorder %v1415_v36, 2  ;;  %vm532_vm14 = vcmp.le.f32.partialorder %v531_v56, 0.7853982 }
  0x70   :  { %v145_v8 = vsel %vm138_vm11, %v141_v12, %v144_v51  ;;  %v352_v18 = vsel %vm345_vm12, %v348_v57, %v351_v52  ;;  %vm1017_vm11 = vcmp.lt.s32.totalorder %v1016_v6, 0  ;;  %vm533_vm12 = vcmp.lt.s32.totalorder %v1185_v16, 0 }
  0x71   :  { %v146_v63 = vsel %vm135_vm13, nan, %v145_v8  ;;  %v353_v30 = vsel %vm135_vm13, nan, %v352_v18  ;;  %v602_v39 = vsel %vm1017_vm11, 0, %v1016_v6 }
  0x72   :  { %v459_v3 = vmul.f32 %v1350_v54, %v146_v63  ;;  %v464_v55 = vmul.f32 %v1350_v54, %v353_v30  ;;  %v469_v29 = vmul.f32 2.0, %v146_v63  ;;  %v1064_v10 = vpop.eup %1063  ;;  %v603_v42 = vsub.s32 32, %v602_v39 }
  0x73   :  { %v1066_v19 = vpop.eup %1065  ;;  %v247_v21 = vxor.u32 2147483648, %v1064_v10  ;;  %v604_v52 = vshll.u32 %v1417_v40, %v602_v39  ;;  %v607_v12 = vsub.s32 4294967266, %v602_v39  ;;  %v617_v39 = vsub.s32 4, %v1403_v31 }
  0x74   :  { %462 = vst [vmem:[#allocation9 + $0x10] sm:$0xff] %v459_v3  ;;  %467 = vst [vmem:[#allocation9 + $0x20] sm:$0xff] %v464_v55  ;;  %v471_v14 = vmul.f32 %v469_v29, %v353_v30  ;;  %v473_v15 = vmul.f32 %v469_v29, %v146_v63  ;;  %v244_v23 = vxor.u32 2147483648, %v1066_v19  ;;  %v605_v46 = vshrl.u32 %v587_v26, %v603_v42 }
  0x75   :  { %v248_v33 = vsel %vm246_vm10, %v247_v21, %v1066_v19  ;;  %v454_v7 = vsel %vm452_vm7, %v247_v21, %v1066_v19  ;;  %v608_v20 = vadd.s32 127, %v607_v12  ;;  %v683_v63 = vshll.u32 %v643_v25, 8 }
  0x76   :  { %v479_v35 = vmul.f32 %v1367_v58, %v471_v14  ;;  %v475_v37 = vsub.f32 1.0, %v473_v15  ;;  %v489_v38 = vmul.f32 2.0, %v471_v14  ;;  %v245_v28 = vsel %vm243_vm9, %v1064_v10, %v244_v23 }
  0x77   :  { %v451_v5 = vsel %vm449_vm3, %v1064_v10, %v244_v23  ;;  %v249_v43 = vsel %vm242_vm8, %v245_v28, %v248_v33  ;;  %v606_v60 = vor.u32 %v605_v46, %v604_v52  ;;  %v609_v3 = vshll.u32 %v608_v20, 23 }
  0x78   :  { %482 = vst [vmem:[#allocation9 + $0x30] sm:$0xff] %v479_v35  ;;  %v484_v32 = vmul.f32 %v1367_v58, %v475_v37  ;;  %v491_v34 = vmul.f32 %v489_v38, %v475_v37  ;;  %v455_v27 = vsel %vm448_vm5, %v451_v5, %v454_v7  ;;  %v493_v41 = vmul.f32 %v489_v38, %v471_v14 }
  0x79   :  { %v250_v44 = vsel %vm239_vm6, nan, %v249_v43  ;;  %v456_v13 = vsel %vm239_vm6, nan, %v455_v27  ;;  %v610_v0 = vor.u32 4788187, %v609_v3  ;;  %v613_v10 = vcvt.s32.f32 %v606_v60 }
  0x7a   :  { %487 = vst [vmem:[#allocation9 + $0x40] sm:$0xff] %v484_v32  ;;  %v499_v45 = vmul.f32 %v1374_v59, %v491_v34  ;;  %v509_v47 = vmul.f32 2.0, %v491_v34  ;;  %v460_v49 = vmul.f32 %v1350_v54, %v250_v44  ;;  %v465_v36 = vmul.f32 %v1350_v54, %v456_v13 }
  0x7b   :  { %v470_v50 = vmul.f32 2.0, %v250_v44  ;;  %v495_v51 = vsub.f32 1.0, %v493_v41  ;;  %v1509_v14 = vmul.u32.u64.low %v683_v63, %v1479_v4  ;;  %v1510_v15 = vmul.u32.u64.high %v683_v63, %v1479_v4, %v1509_v14 }
  0x7c   :  { %502 = vst [vmem:[#allocation9 + $0x50] sm:$0xff] %v499_v45  ;;  %v513_v9 = vmul.f32 %v509_v47, %v491_v34  ;;  %463 = vst [vmem:[#allocation9 + $0x18] sm:$0xff] %v460_v49  ;;  %v611_v25 = vand.u32 2147483647, %v610_v0  ;;  %v1514_v23 = vmul.u32.u64.low %v683_v63, %v1470_v11  ;;  %v1515_v35 = vmul.u32.u64.high %v683_v63, %v1470_v11, %v1514_v23 }
  0x7d   :  { %468 = vst [vmem:[#allocation9 + $0x28] sm:$0xff] %v465_v36  ;;  %v472_v1 = vmul.f32 %v470_v50, %v456_v13  ;;  %v474_v57 = vmul.f32 %v470_v50, %v250_v44  ;;  %v504_v48 = vmul.f32 %v1374_v59, %v495_v51  ;;  %v511_v8 = vmul.f32 %v509_v47, %v495_v51 }
  0x7e   :  { %v515_v18 = vsub.f32 1.0, %v513_v9  ;;  %v614_v33 = vmul.f32 %v613_v10, %v611_v25  ;;  %v691_v4 = vadd.s32 %v1514_v23, %v1510_v15  ;;  %vm692_vm13 = vc.u32 %v1510_v15, %v1514_v23 }
  0x7f   :  { %v480_v54 = vmul.f32 %v1367_v58, %v472_v1  ;;  %v476_v30 = vsub.f32 1.0, %v474_v57  ;;  %v490_v2 = vmul.f32 2.0, %v472_v1  ;;  %507 = vst [vmem:[#allocation9 + $0x60] sm:$0xff] %v504_v48  ;;  %v519_v40 = vmul.f32 %v1377_v61, %v511_v8 }
  0x80   :  { %v524_v22 = vmul.f32 %v1377_v61, %v515_v18  ;;  %v690_v11 = vmul.u32 %v683_v63, %v1439_v53  ;;  %v693_v28 = vadd.s32 1, %v1515_v35  ;;  %v618_v43 = vsel %vm533_vm12, %v617_v39, %v1403_v31 }
  0x81   :  { %483 = vst [vmem:[#allocation9 + $0x38] sm:$0xff] %v480_v54  ;;  %v485_v55 = vmul.f32 %v1367_v58, %v476_v30  ;;  %v492_v29 = vmul.f32 %v490_v2, %v476_v30  ;;  %v494_v6 = vmul.f32 %v490_v2, %v472_v1  ;;  %522 = vst [vmem:[#allocation9 + $0x70] sm:$0xff] %v519_v40  ;;  %v620_v41 = vsel %vm532_vm14, 0, %v618_v43 }
  0x82   :  { %527 = vst [vmem:[#allocation9 + $0x80] sm:$0xff] %v524_v22  ;;  %v694_v34 = vsel %vm692_vm13, %v693_v28, %v1515_v35  ;;  %v832_v49 = vand.u32 3, %v620_v41  ;;  %vm623_vm5 = vweird.f32 %v1185_v16  ;;  %v1539_v48 = vstv %s1030_s23 }
  0x83   :  { %488 = vst [vmem:[#allocation9 + $0x48] sm:$0xff] %v485_v55  ;;  %v500_v17 = vmul.f32 %v1374_v59, %v492_v29  ;;  %v496_v19 = vsub.f32 1.0, %v494_v6  ;;  %v510_v21 = vmul.f32 2.0, %v492_v29  ;;  %v695_v27 = vadd.s32 %v694_v34, %v690_v11 }
  0x84   :  { %vm837_vm0 = vcmp.eq.s32.totalorder %v832_v49, 2  ;;  %vm834_vm2 = vcmp.eq.s32.totalorder %v832_v49, 0  ;;  %vm833_vm4 = vcmp.lt.s32.totalorder %v832_v49, 2  ;;  %v966_v6 = vstv %s1031_s24 }
  0x85   :  { %503 = vst [vmem:[#allocation9 + $0x58] sm:$0xff] %v500_v17  ;;  %v505_v58 = vmul.f32 %v1374_v59, %v496_v19  ;;  %v512_v37 = vmul.f32 %v510_v21, %v496_v19  ;;  %v514_v38 = vmul.f32 %v510_v21, %v492_v29  ;;  %v615_v59 = vxor.u32 2147483648, %v614_v33 }
  0x86   :  { %v696_v56 = vadd.s32 536870912, %v695_v27  ;;  %vm637_vm7 = vcmp.lt.s32.totalorder %v1267_v24, 0  ;;  %vm636_vm8 = vcmp.le.f32.partialorder %v635_v62, 0.7853982 }
  0x87   :  { %508 = vst [vmem:[#allocation9 + $0x68] sm:$0xff] %v505_v58  ;;  %v520_v7 = vmul.f32 %v1377_v61, %v512_v37  ;;  %v516_v26 = vsub.f32 1.0, %v514_v38  ;;  %v616_v32 = vsel %vm533_vm12, %v615_v59, %v614_v33 }
  0x88   :  { %v619_v53 = vsel %vm532_vm14, %v1185_v16, %v616_v32  ;;  %v1535_v42 = vshrl.u32 %v696_v56, 30 }
  0x89   :  { %523 = vst [vmem:[#allocation9 + $0x78] sm:$0xff] %v520_v7  ;;  %v525_v5 = vmul.f32 %v1377_v61, %v516_v26  ;;  %1067 = vcosq.f32 %v619_v53  ;;  %v624_v61 = vadd.s32 3, %v620_v41 }
  0x8a   :  { %1069 = vsinq.f32 %v619_v53  ;;  %v698_v44 = vshll.u32 %v1535_v42, 30  ;;  %v721_v37 = vsub.s32 4, %v1535_v42 }
  0x8b   :  { %528 = vst [vmem:[#allocation9 + $0x88] sm:$0xff] %v525_v5  ;;  %v625_v45 = vand.u32 3, %v624_v61 }
  0x8c   :  { %v699_v13 = vsub.s32 %v695_v27, %v698_v44 }
  0x8d   :  { %vm630_vm15 = vcmp.eq.s32.totalorder %v625_v45, 2  ;;  %vm627_vm1 = vcmp.eq.s32.totalorder %v625_v45, 0  ;;  %vm626_vm3 = vcmp.lt.s32.totalorder %v625_v45, 2 }
  0x8e   :  { %v701_v47 = vsub.s32 0, %v699_v13 }
  0x90   :  { %v1019_v36 = vmin.u32 %v701_v47, %v699_v13 }
  0x92   :  { %v703_v31 = vclz %v1019_v36 }
  0x94   :  { %v1020_v46 = vadd.s32 4294967294, %v703_v31 }
  0x96   :  { %v1068_v50 = vpop.eup %1067  ;;  %vm1021_vm6 = vcmp.lt.s32.totalorder %v1020_v46, 0 }
  0x97   :  { %v1070_v51 = vpop.eup %1069  ;;  %v631_v9 = vxor.u32 2147483648, %v1068_v50  ;;  %v706_v60 = vsel %vm1021_vm6, 0, %v1020_v46 }
  0x98   :  { %v628_v52 = vxor.u32 2147483648, %v1070_v51  ;;  %v707_v54 = vsub.s32 32, %v706_v60  ;;  %v708_v30 = vshll.u32 %v699_v13, %v706_v60  ;;  %v711_v2 = vsub.s32 4294967266, %v706_v60 }
  0x99   :  { %v632_v12 = vsel %vm630_vm15, %v631_v9, %v1070_v51  ;;  %v839_v1 = vsel %vm837_vm0, %v631_v9, %v1070_v51  ;;  %vm727_vm15 = vweird.f32 %v1267_v24 }
  0x9a   :  { %v629_v57 = vsel %vm627_vm1, %v1068_v50, %v628_v52  ;;  %v836_v8 = vsel %vm834_vm2, %v1068_v50, %v628_v52  ;;  %v709_v55 = vshrl.u32 %v691_v4, %v707_v54  ;;  %v712_v16 = vadd.s32 127, %v711_v2 }
  0x9b   :  { %v633_v18 = vsel %vm626_vm3, %v629_v57, %v632_v12  ;;  %v840_v20 = vsel %vm833_vm4, %v836_v8, %v839_v1  ;;  %v722_v4 = vsel %vm637_vm7, %v721_v37, %v1535_v42 }
  0x9c   :  { %v634_v63 = vsel %vm623_vm5, nan, %v633_v18  ;;  %v841_v22 = vsel %vm623_vm5, nan, %v840_v20  ;;  %v710_v14 = vor.u32 %v709_v55, %v708_v30  ;;  %v713_v15 = vshll.u32 %v712_v16, 23 }
  0x9d   :  { %v947_v40 = vmul.f32 %v1539_v48, %v634_v63  ;;  %v957_v3 = vmul.f32 2.0, %v634_v63  ;;  %v952_v29 = vmul.f32 %v1539_v48, %v841_v22  ;;  %v724_v26 = vsel %vm636_vm8, 0, %v722_v4 }
  0x9e   :  { %v714_v21 = vor.u32 4788187, %v713_v15  ;;  %v717_v25 = vcvt.s32.f32 %v710_v14  ;;  %v728_v39 = vadd.s32 3, %v724_v26  ;;  %v935_v59 = vand.u32 3, %v724_v26 }
  0x9f   :  { %950 = vst [vmem:[#allocation9 + $0x90] sm:$0xff] %v947_v40  ;;  %v959_v0 = vmul.f32 %v957_v3, %v841_v22  ;;  %v961_v10 = vmul.f32 %v957_v3, %v634_v63  ;;  %955 = vst [vmem:[#allocation9 + $0xa0] sm:$0xff] %v952_v29 }
  0xa0   :  { %v715_v35 = vand.u32 2147483647, %v714_v21  ;;  %v729_v11 = vand.u32 3, %v728_v39  ;;  %vm940_vm10 = vcmp.eq.s32.totalorder %v935_v59, 2  ;;  %vm937_vm12 = vcmp.eq.s32.totalorder %v935_v59, 0 }
  0xa1   :  { %v967_v17 = vmul.f32 %v966_v6, %v959_v0  ;;  %v963_v19 = vsub.f32 1.0, %v961_v10  ;;  %vm936_vm14 = vcmp.lt.s32.totalorder %v935_v59, 2 }
  0xa2   :  { %v718_v58 = vmul.f32 %v717_v25, %v715_v35  ;;  %vm734_vm9 = vcmp.eq.s32.totalorder %v729_v11, 2  ;;  %vm731_vm11 = vcmp.eq.s32.totalorder %v729_v11, 0  ;;  %vm730_vm13 = vcmp.lt.s32.totalorder %v729_v11, 2 }
  0xa3   :  { %970 = vst [vmem:[#allocation9 + $0xb0] sm:$0xff] %v967_v17  ;;  %v972_v23 = vmul.f32 %v966_v6, %v963_v19 }
  0xa4   :  { %v719_v38 = vxor.u32 2147483648, %v718_v58 }
  0xa5   :  { %975 = vst [vmem:[#allocation9 + $0xc0] sm:$0xff] %v972_v23 }
  0xa6   :  { %v720_v33 = vsel %vm637_vm7, %v719_v38, %v718_v58 }
  0xa7   :  { %v723_v7 = vsel %vm636_vm8, %v1267_v24, %v720_v33 }
  0xa8   :  { %1071 = vcosq.f32 %v723_v7 }
  0xa9   :  { %1073 = vsinq.f32 %v723_v7 }
  0xb5   :  { %v1072_v28 = vpop.eup %1071 }
  0xb6   :  { %v1074_v5 = vpop.eup %1073  ;;  %v735_v32 = vxor.u32 2147483648, %v1072_v28 }
  0xb7   :  { %v732_v62 = vxor.u32 2147483648, %v1074_v5 }
  0xb8   :  { %v736_v34 = vsel %vm734_vm9, %v735_v32, %v1074_v5  ;;  %v942_v43 = vsel %vm940_vm10, %v735_v32, %v1074_v5 }
  0xb9   :  { %v733_v53 = vsel %vm731_vm11, %v1072_v28, %v732_v62  ;;  %v939_v27 = vsel %vm937_vm12, %v1072_v28, %v732_v62 }
  0xba   :  { %v737_v56 = vsel %vm730_vm13, %v733_v53, %v736_v34  ;;  %v943_v41 = vsel %vm936_vm14, %v939_v27, %v942_v43 }
  0xbb   :  { %v738_v42 = vsel %vm727_vm15, nan, %v737_v56  ;;  %v944_v61 = vsel %vm727_vm15, nan, %v943_v41 }
  0xbc   :  { %v948_v44 = vmul.f32 %v1539_v48, %v738_v42  ;;  %v953_v13 = vmul.f32 %v1539_v48, %v944_v61  ;;  %v958_v45 = vmul.f32 2.0, %v738_v42 }
  0xbe   :  { %951 = vst [vmem:[#allocation9 + $0x98] sm:$0xff] %v948_v44  ;;  %956 = vst [vmem:[#allocation9 + $0xa8] sm:$0xff] %v953_v13  ;;  %v960_v47 = vmul.f32 %v958_v45, %v944_v61  ;;  %v962_v49 = vmul.f32 %v958_v45, %v738_v42 }
  0xc0   :  { %v968_v24 = vmul.f32 %v966_v6, %v960_v47  ;;  %v964_v36 = vsub.f32 1.0, %v962_v49 }
  0xc2   :  { %971 = vst [vmem:[#allocation9 + $0xb8] sm:$0xff] %v968_v24  ;;  %v973_v50 = vmul.f32 %v966_v6, %v964_v36 }
  0xc4   :  { %976 = vst [vmem:[#allocation9 + $0xc8] sm:$0xff] %v973_v50 }
  0xc5   :  { %1118 = shalt.err (!%p1115_p0)
}
  0xc6   :  { %s1142_s28 = smov 256   ;;  %s1143_s29 = smov 16  }
  0xc7   :  { %988 = dma.vmem_to_hbm [thread:$0]  %s983_s26, 3328, %s1558_s3, [#allocation6], %s1142_s28, %s1142_s28, %s1143_s29  }
  0xc8   :  { %1131 = dma.done.wait [#allocation6], 3328  }
  0xc9   :  { %1132 = vsyncadd [#allocation6], 4294963968 }
  0xca   :  { %992 = vsyncpa [#allocation5], 1 }
  0xcb   :  { %993 = vsyncpa [#allocation6], 1 }
  0xcc   :  { %994 = vsyncpa [#allocation7], 1 }

</bundles_post_ra>
